<compile_context>
chip_gen: v6e
topology: v6e:2x2x1
jax: 0.10.0
libtpu: 0.0.40
codegen_flags: <defaults>
</compile_context>

<pallas_src>
import functools

import jax
import jax.numpy as jnp
from jax.experimental import pallas as pl
from jax.experimental.pallas import tpu as pltpu


def _round_up(x, m):
    return ((x + m - 1) // m) * m


# --------------------------------------------------------------------------
# Kernel: one batch tile (TB, F) -> 4-layer MLP -> fused merge with y.
# --------------------------------------------------------------------------
def _decoder_kernel(y_ref, mask_ref, w1_ref, b1_ref, w2_ref, b2_ref,
                    w3_ref, b3_ref, w4_ref, b4_ref, o_ref):
    y = y_ref[...]                      # (TB, F) f32 — control values pass
    mask = mask_ref[...]                # (1, F)  f32   through bit-exactly.

    h = jnp.dot(y.astype(jnp.bfloat16), w1_ref[...],
                preferred_element_type=jnp.float32)
    h = jnp.maximum(h + b1_ref[...], 0.0)
    h = jnp.dot(h.astype(jnp.bfloat16), w2_ref[...],
                preferred_element_type=jnp.float32)
    h = jnp.maximum(h + b2_ref[...], 0.0)
    h = jnp.dot(h.astype(jnp.bfloat16), w3_ref[...],
                preferred_element_type=jnp.float32)
    h = jnp.maximum(h + b3_ref[...], 0.0)
    mlp = jnp.dot(h.astype(jnp.bfloat16), w4_ref[...],
                  preferred_element_type=jnp.float32) + b4_ref[...]

    # W4 columns and b4 are exactly zero at control indices => mlp == 0 there,
    # and mask is exactly 1.0/0.0, so `mlp + mask*y` reproduces the control
    # pass-through bit-exactly without the compare+select of jnp.where.
    o_ref[...] = (mlp + mask * y).astype(o_ref.dtype)


# --------------------------------------------------------------------------
# Wrapper
# --------------------------------------------------------------------------
@functools.partial(jax.jit, static_argnames=("nxny",))
def decoder_forward(y, prepared, *, nxny):
    """JAX/Pallas equivalent of Decoder.forward.

    y: (B, nxny) float32 (the PyTorch module implicitly requires P == nxny).
    prepared: output of prepare_decoder_params (padded/scattered weights + mask).
    """
    mask, w1, b1, w2, b2, w3, b3, w4, b4 = prepared
    B = y.shape[0]
    F = w1.shape[0]          # padded feature width (multiple of 128)
    Hp = w1.shape[1]         # padded hidden width (multiple of 128)
    assert y.shape[1] == nxny, "Decoder.forward requires P == nxny"

    y = y.astype(jnp.float32)

    # Batch tile: big (amortize ~0.35us/grid-step overhead, efficient DMA
    # bursts), multiple of 16 so bf16 casts fill whole (16,128) vregs.
    TB = min(512, _round_up(B, 16))
    B_pad = _round_up(B, TB)
    n_tiles = B_pad // TB
    # v7x megacore: make sure the "parallel" batch axis has >= 2 steps when the
    # tile can be halved while staying a multiple of 16.
    if n_tiles == 1 and TB >= 32 and TB % 32 == 0:
        TB //= 2
        B_pad = _round_up(B, TB)
        n_tiles = B_pad // TB

    needs_pad = (B_pad != B) or (F != nxny)
    if needs_pad:
        # Pad only what is missing (batch rows and/or feature lanes).
        y_p = jnp.pad(y, ((0, B_pad - B), (0, F - nxny)))
        # The padded buffer is a fresh temp inside this jit: alias it to the
        # output so no second full-size HBM buffer is allocated.
        io_aliases = {0: 0}
    else:
        y_p = y
        io_aliases = {}

    flops = 2 * B_pad * (F * Hp + 2 * Hp * Hp + Hp * F)
    bytes_accessed = (B_pad * F * 4                                   # y stream
                      + (w1.size + w2.size + w3.size + w4.size) * 2   # bf16 w
                      + (b1.size + b2.size + b3.size + b4.size) * 4
                      + mask.size * 4
                      + B_pad * F * 4)                                # output

    row_spec = pl.BlockSpec((TB, F), lambda i: (i, 0))
    # Grid-invariant operands: single-buffer them (nothing to overlap).
    resident = lambda shape: pl.BlockSpec(shape, lambda i: (0, 0),
                                          pipeline_mode=pl.Buffered(1))

    out = pl.pallas_call(
        _decoder_kernel,
        out_shape=jax.ShapeDtypeStruct((B_pad, F), jnp.float32),
        grid=(n_tiles,),
        in_specs=[
            row_spec,
            resident(mask.shape),
            resident(w1.shape), resident(b1.shape),
            resident(w2.shape), resident(b2.shape),
            resident(w3.shape), resident(b3.shape),
            resident(w4.shape), resident(b4.shape),
        ],
        out_specs=row_spec,
        input_output_aliases=io_aliases,
        compiler_params=pltpu.CompilerParams(
            dimension_semantics=("parallel",)),
        cost_estimate=pl.CostEstimate(
            flops=flops, transcendentals=0, bytes_accessed=bytes_accessed),
    )(y_p, mask, w1, b1, w2, b2, w3, b3, w4, b4)

    if not needs_pad:
        return out
    return out[:B, :nxny]


# --------------------------------------------------------------------------
# Parameters: nn.Linear-style init (weights stored (in, out) so x @ W + b
# matches PyTorch's x @ W.T + b), then padded/scattered for the kernel.
# --------------------------------------------------------------------------
def init_decoder_params(key, in_dim, hidden_dim, out_dim):
    dims = [(in_dim, hidden_dim), (hidden_dim, hidden_dim),
            (hidden_dim, hidden_dim), (hidden_dim, out_dim)]
    params = []
    for fan_in, fan_out in dims:
        kw, kb, key = jax.random.split(key, 3)
        bound = 1.0 / jnp.sqrt(fan_in)
        w = jax.random.uniform(kw, (fan_in, fan_out), jnp.float32, -bound, bound)
        b = jax.random.uniform(kb, (1, fan_out), jnp.float32, -bound, bound)
        params += [w, b]
    return tuple(params)


def prepare_decoder_params(params, control_indices, non_control_indices,
                           nxny, M, hidden_dim):
    """Pad hidden -> multiple of 128, features -> multiple of 128, scatter W1
    rows / W4,b4 columns to full feature width (zero rows/cols at control
    indices so control inputs never leak into the MLP). Weights cast to bf16."""
    w1, b1, w2, b2, w3, b3, w4, b4 = params
    F = _round_up(nxny, 128)
    Hp = _round_up(hidden_dim, 128)   # leave at 128: op is HBM-bound, wider Hp
                                      # only adds wasted FLOPs/VMEM.

    def pad2(a, shape):
        return jnp.zeros(shape, jnp.float32).at[:a.shape[0], :a.shape[1]].set(a)

    w1_full = jnp.zeros((F, Hp), jnp.float32).at[non_control_indices].set(
        pad2(w1, (nxny - M, Hp)))
    b1_full = pad2(b1, (1, Hp))
    w2_full = pad2(w2, (Hp, Hp))
    b2_full = pad2(b2, (1, Hp))
    w3_full = pad2(w3, (Hp, Hp))
    b3_full = pad2(b3, (1, Hp))
    w4_full = jnp.zeros((Hp, F), jnp.float32).at[:, non_control_indices].set(
        pad2(w4, (Hp, nxny - M)))
    b4_full = jnp.zeros((1, F), jnp.float32).at[:, non_control_indices].set(b4[0])

    mask = jnp.zeros((1, F), jnp.float32).at[:, control_indices].set(1.0)

    bf = jnp.bfloat16
    return (mask,
            w1_full.astype(bf), b1_full,
            w2_full.astype(bf), b2_full,
            w3_full.astype(bf), b3_full,
            w4_full.astype(bf), b4_full)


if __name__ == "__main__":
    # Small shapes consistent with the module: a 16x16 heat-equation grid.
    nxny = 16 * 16          # 256 grid points
    M = 8                   # number of control points
    P = nxny                # the PyTorch forward implicitly requires P == nxny
    hidden_dim = 32

    key = jax.random.PRNGKey(0)
    k_y, k_y2, k_p = jax.random.split(key, 3)

    control_indices = jnp.array([3, 20, 45, 77, 100, 150, 200, 230],
                                dtype=jnp.int32)
    bool_mask = jnp.ones((nxny,), dtype=bool).at[control_indices].set(False)
    non_control_indices = jnp.nonzero(bool_mask, size=nxny - M)[0].astype(jnp.int32)

    params = init_decoder_params(k_p, P - M, hidden_dim, nxny - M)
    prepared = prepare_decoder_params(params, control_indices,
                                      non_control_indices, nxny, M, hidden_dim)

    # Invariant required for the fused `mlp + mask*y` pass-through:
    # W4 columns and b4 entries at control indices are exactly zero.
    assert float(jnp.abs(prepared[7][:, control_indices].astype(jnp.float32)).max()) == 0.0
    assert float(jnp.abs(prepared[8][:, control_indices]).max()) == 0.0

    # ---- references ----------------------------------------------------------
    mask_f, w1b, b1f, w2b, b2f, w3b, b3f, w4b, b4f = prepared

    def ref_bf16(y_in):
        """Same padded bf16 weights, plain JAX (exact-path reference)."""
        Bn = y_in.shape[0]
        F = w1b.shape[0]
        yp = jnp.zeros((Bn, F), jnp.float32).at[:, :nxny].set(y_in)
        h = jnp.maximum(jnp.dot(yp.astype(jnp.bfloat16), w1b,
                                preferred_element_type=jnp.float32) + b1f, 0.0)
        h = jnp.maximum(jnp.dot(h.astype(jnp.bfloat16), w2b,
                                preferred_element_type=jnp.float32) + b2f, 0.0)
        h = jnp.maximum(jnp.dot(h.astype(jnp.bfloat16), w3b,
                                preferred_element_type=jnp.float32) + b3f, 0.0)
        mlp = jnp.dot(h.astype(jnp.bfloat16), w4b,
                      preferred_element_type=jnp.float32) + b4f
        return (mlp + mask_f * yp)[:, :nxny]

    def ref_f32(y_in):
        """Original f32 gather/scatter module semantics."""
        w1, b1, w2, b2, w3, b3, w4, b4 = params
        h = y_in[:, non_control_indices]
        h = jnp.maximum(h @ w1 + b1, 0.0)
        h = jnp.maximum(h @ w2 + b2, 0.0)
        h = jnp.maximum(h @ w3 + b3, 0.0)
        h = h @ w4 + b4
        out = jnp.zeros((y_in.shape[0], nxny), jnp.float32)
        out = out.at[:, control_indices].set(y_in[:, control_indices])
        out = out.at[:, non_control_indices].set(h)
        return out

    def check(y_in):
        x = decoder_forward(y_in, prepared, nxny=nxny)
        jax.block_until_ready(x)
        assert x.shape == y_in.shape
        # 1) Control columns pass through exactly.
        assert jnp.array_equal(x[:, control_indices], y_in[:, control_indices])
        # 2) Exact-path bf16 reference.
        assert jnp.allclose(x, ref_bf16(y_in), atol=2e-3, rtol=2e-3)
        # 3) Loose semantic check vs the original f32 module (bf16 weights
        #    introduce ~1e-2 level differences at most).
        assert jnp.allclose(x, ref_f32(y_in), atol=1e-1, rtol=0.0)
        return x

    # Small batch (exercises the batch-padded + io-aliased path).
    y_small = jax.random.normal(k_y, (4, P), dtype=jnp.float32)
    check(y_small)

    # Tile-aligned batch (exercises the unpadded, 2-tile "parallel" path).
    y_big = jax.random.normal(k_y2, (32, P), dtype=jnp.float32)
    check(y_big)

    print("KERNEL_OK")
</pallas_src>

<mosaic_0001>
module attributes {stable_mosaic.version = 11 : i64} {
  func.func @_decoder_kernel(%arg0: i32, %arg1: memref<16x256xf32, #tpu.memory_space<vmem>>, %arg2: memref<1x256xf32, #tpu.memory_space<vmem>>, %arg3: memref<256x128xbf16, #tpu.memory_space<vmem>>, %arg4: memref<1x128xf32, #tpu.memory_space<vmem>>, %arg5: memref<128x128xbf16, #tpu.memory_space<vmem>>, %arg6: memref<1x128xf32, #tpu.memory_space<vmem>>, %arg7: memref<128x128xbf16, #tpu.memory_space<vmem>>, %arg8: memref<1x128xf32, #tpu.memory_space<vmem>>, %arg9: memref<128x256xbf16, #tpu.memory_space<vmem>>, %arg10: memref<1x256xf32, #tpu.memory_space<vmem>>, %arg11: memref<16x256xf32, #tpu.memory_space<vmem>>) attributes {dimension_semantics = [#tpu.dimension_semantics<parallel>], iteration_bounds = array<i64: 1>, scalar_prefetch = 0 : i64, scratch_operands = 0 : i64, tpu.core_type = #tpu.core_type<tc>, window_params = [{transform_indices = @transform_0, window_bounds = array<i64: 16, 256>}, {pipeline_mode = #tpu.pipeline_mode<synchronous>, transform_indices = @transform_1, window_bounds = array<i64: 1, 256>}, {pipeline_mode = #tpu.pipeline_mode<synchronous>, transform_indices = @transform_2, window_bounds = array<i64: 256, 128>}, {pipeline_mode = #tpu.pipeline_mode<synchronous>, transform_indices = @transform_3, window_bounds = array<i64: 1, 128>}, {pipeline_mode = #tpu.pipeline_mode<synchronous>, transform_indices = @transform_4, window_bounds = array<i64: 128, 128>}, {pipeline_mode = #tpu.pipeline_mode<synchronous>, transform_indices = @transform_5, window_bounds = array<i64: 1, 128>}, {pipeline_mode = #tpu.pipeline_mode<synchronous>, transform_indices = @transform_6, window_bounds = array<i64: 128, 128>}, {pipeline_mode = #tpu.pipeline_mode<synchronous>, transform_indices = @transform_7, window_bounds = array<i64: 1, 128>}, {pipeline_mode = #tpu.pipeline_mode<synchronous>, transform_indices = @transform_8, window_bounds = array<i64: 128, 256>}, {pipeline_mode = #tpu.pipeline_mode<synchronous>, transform_indices = @transform_9, window_bounds = array<i64: 1, 256>}, {transform_indices = @transform_10, window_bounds = array<i64: 16, 256>}]} {
    %c0 = arith.constant 0 : index
    %c0_0 = arith.constant 0 : index
    %0 = vector.load %arg1[%c0, %c0_0] : memref<16x256xf32, #tpu.memory_space<vmem>>, vector<16x256xf32>
    %c0_1 = arith.constant 0 : index
    %c0_2 = arith.constant 0 : index
    %1 = vector.load %arg2[%c0_1, %c0_2] : memref<1x256xf32, #tpu.memory_space<vmem>>, vector<1x256xf32>
    %2 = arith.truncf %0 : vector<16x256xf32> to vector<16x256xbf16>
    %c0_3 = arith.constant 0 : index
    %c0_4 = arith.constant 0 : index
    %3 = vector.load %arg3[%c0_3, %c0_4] : memref<256x128xbf16, #tpu.memory_space<vmem>>, vector<256x128xbf16>
    %cst = arith.constant dense<0.000000e+00> : vector<16x128xf32>
    %4 = tpu.matmul %2, %3, %cst {dimension_numbers = #tpu.dot_dimension_numbers<[1], [0], [0], [1], [0, 0, 1, 1], [], []>} : vector<16x256xbf16>, vector<256x128xbf16>, vector<16x128xf32> -> vector<16x128xf32>
    %c0_5 = arith.constant 0 : index
    %c0_6 = arith.constant 0 : index
    %5 = vector.load %arg4[%c0_5, %c0_6] : memref<1x128xf32, #tpu.memory_space<vmem>>, vector<1x128xf32>
    %6 = vector.broadcast %5 : vector<1x128xf32> to vector<16x128xf32>
    %7 = arith.addf %4, %6 : vector<16x128xf32>
    %cst_7 = arith.constant 0.000000e+00 : f32
    %8 = vector.broadcast %cst_7 : f32 to vector<16x128xf32>
    %9 = arith.maximumf %7, %8 : vector<16x128xf32>
    %10 = arith.truncf %9 : vector<16x128xf32> to vector<16x128xbf16>
    %c0_8 = arith.constant 0 : index
    %c0_9 = arith.constant 0 : index
    %11 = vector.load %arg5[%c0_8, %c0_9] : memref<128x128xbf16, #tpu.memory_space<vmem>>, vector<128x128xbf16>
    %cst_10 = arith.constant dense<0.000000e+00> : vector<16x128xf32>
    %12 = tpu.matmul %10, %11, %cst_10 {dimension_numbers = #tpu.dot_dimension_numbers<[1], [0], [0], [1], [0, 0, 1, 1], [], []>} : vector<16x128xbf16>, vector<128x128xbf16>, vector<16x128xf32> -> vector<16x128xf32>
    %c0_11 = arith.constant 0 : index
    %c0_12 = arith.constant 0 : index
    %13 = vector.load %arg6[%c0_11, %c0_12] : memref<1x128xf32, #tpu.memory_space<vmem>>, vector<1x128xf32>
    %14 = vector.broadcast %13 : vector<1x128xf32> to vector<16x128xf32>
    %15 = arith.addf %12, %14 : vector<16x128xf32>
    %cst_13 = arith.constant 0.000000e+00 : f32
    %16 = vector.broadcast %cst_13 : f32 to vector<16x128xf32>
    %17 = arith.maximumf %15, %16 : vector<16x128xf32>
    %18 = arith.truncf %17 : vector<16x128xf32> to vector<16x128xbf16>
    %c0_14 = arith.constant 0 : index
    %c0_15 = arith.constant 0 : index
    %19 = vector.load %arg7[%c0_14, %c0_15] : memref<128x128xbf16, #tpu.memory_space<vmem>>, vector<128x128xbf16>
    %cst_16 = arith.constant dense<0.000000e+00> : vector<16x128xf32>
    %20 = tpu.matmul %18, %19, %cst_16 {dimension_numbers = #tpu.dot_dimension_numbers<[1], [0], [0], [1], [0, 0, 1, 1], [], []>} : vector<16x128xbf16>, vector<128x128xbf16>, vector<16x128xf32> -> vector<16x128xf32>
    %c0_17 = arith.constant 0 : index
    %c0_18 = arith.constant 0 : index
    %21 = vector.load %arg8[%c0_17, %c0_18] : memref<1x128xf32, #tpu.memory_space<vmem>>, vector<1x128xf32>
    %22 = vector.broadcast %21 : vector<1x128xf32> to vector<16x128xf32>
    %23 = arith.addf %20, %22 : vector<16x128xf32>
    %cst_19 = arith.constant 0.000000e+00 : f32
    %24 = vector.broadcast %cst_19 : f32 to vector<16x128xf32>
    %25 = arith.maximumf %23, %24 : vector<16x128xf32>
    %26 = arith.truncf %25 : vector<16x128xf32> to vector<16x128xbf16>
    %c0_20 = arith.constant 0 : index
    %c0_21 = arith.constant 0 : index
    %27 = vector.load %arg9[%c0_20, %c0_21] : memref<128x256xbf16, #tpu.memory_space<vmem>>, vector<128x256xbf16>
    %cst_22 = arith.constant dense<0.000000e+00> : vector<16x256xf32>
    %28 = tpu.matmul %26, %27, %cst_22 {dimension_numbers = #tpu.dot_dimension_numbers<[1], [0], [0], [1], [0, 0, 1, 1], [], []>} : vector<16x128xbf16>, vector<128x256xbf16>, vector<16x256xf32> -> vector<16x256xf32>
    %c0_23 = arith.constant 0 : index
    %c0_24 = arith.constant 0 : index
    %29 = vector.load %arg10[%c0_23, %c0_24] : memref<1x256xf32, #tpu.memory_space<vmem>>, vector<1x256xf32>
    %30 = vector.broadcast %29 : vector<1x256xf32> to vector<16x256xf32>
    %31 = arith.addf %28, %30 : vector<16x256xf32>
    %32 = vector.broadcast %1 : vector<1x256xf32> to vector<16x256xf32>
    %33 = arith.mulf %32, %0 : vector<16x256xf32>
    %34 = arith.addf %31, %33 : vector<16x256xf32>
    %c0_25 = arith.constant 0 : index
    %c0_26 = arith.constant 0 : index
    %35 = vector.load %arg11[%c0_25, %c0_26] : memref<16x256xf32, #tpu.memory_space<vmem>>, vector<16x256xf32>
    tpu.vector_store %arg11[%c0_25, %c0_26], %34 {strides = array<i32>} : memref<16x256xf32, #tpu.memory_space<vmem>>, vector<16x256xf32>,
    return
  }
  func.func @transform_0(%arg0: i32) -> (i32, i32) {
    %c0_i32 = arith.constant 0 : i32
    %c0_i32_0 = arith.constant 0 : i32
    return %arg0, %c0_i32 : i32, i32
  }
  func.func @transform_1(%arg0: i32) -> (i32, i32) {
    %c0_i32 = arith.constant 0 : i32
    %c0_i32_0 = arith.constant 0 : i32
    %c0_i32_1 = arith.constant 0 : i32
    return %c0_i32, %c0_i32_0 : i32, i32
  }
  func.func @transform_2(%arg0: i32) -> (i32, i32) {
    %c0_i32 = arith.constant 0 : i32
    %c0_i32_0 = arith.constant 0 : i32
    %c0_i32_1 = arith.constant 0 : i32
    return %c0_i32, %c0_i32_0 : i32, i32
  }
  func.func @transform_3(%arg0: i32) -> (i32, i32) {
    %c0_i32 = arith.constant 0 : i32
    %c0_i32_0 = arith.constant 0 : i32
    %c0_i32_1 = arith.constant 0 : i32
    return %c0_i32, %c0_i32_0 : i32, i32
  }
  func.func @transform_4(%arg0: i32) -> (i32, i32) {
    %c0_i32 = arith.constant 0 : i32
    %c0_i32_0 = arith.constant 0 : i32
    %c0_i32_1 = arith.constant 0 : i32
    return %c0_i32, %c0_i32_0 : i32, i32
  }
  func.func @transform_5(%arg0: i32) -> (i32, i32) {
    %c0_i32 = arith.constant 0 : i32
    %c0_i32_0 = arith.constant 0 : i32
    %c0_i32_1 = arith.constant 0 : i32
    return %c0_i32, %c0_i32_0 : i32, i32
  }
  func.func @transform_6(%arg0: i32) -> (i32, i32) {
    %c0_i32 = arith.constant 0 : i32
    %c0_i32_0 = arith.constant 0 : i32
    %c0_i32_1 = arith.constant 0 : i32
    return %c0_i32, %c0_i32_0 : i32, i32
  }
  func.func @transform_7(%arg0: i32) -> (i32, i32) {
    %c0_i32 = arith.constant 0 : i32
    %c0_i32_0 = arith.constant 0 : i32
    %c0_i32_1 = arith.constant 0 : i32
    return %c0_i32, %c0_i32_0 : i32, i32
  }
  func.func @transform_8(%arg0: i32) -> (i32, i32) {
    %c0_i32 = arith.constant 0 : i32
    %c0_i32_0 = arith.constant 0 : i32
    %c0_i32_1 = arith.constant 0 : i32
    return %c0_i32, %c0_i32_0 : i32, i32
  }
  func.func @transform_9(%arg0: i32) -> (i32, i32) {
    %c0_i32 = arith.constant 0 : i32
    %c0_i32_0 = arith.constant 0 : i32
    %c0_i32_1 = arith.constant 0 : i32
    return %c0_i32, %c0_i32_0 : i32, i32
  }
  func.func @transform_10(%arg0: i32) -> (i32, i32) {
    %c0_i32 = arith.constant 0 : i32
    %c0_i32_0 = arith.constant 0 : i32
    return %arg0, %c0_i32 : i32, i32
  }
}

</mosaic_0001>

<bundles_post_ra>
// kernel: decoder_forward.1
= control target key start
LH: loop header
LB: loop body
LE: loop exit
PB: predicated region body
PF: predicated region fallthrough
CT: control target
= control target key end

     0   :  { %15 = vsyncpa [#allocation3], 0  ;;  %s1123_s0 = inlined_call_operand.vmem [shape: f32[16,256], index: 0, kind: input, shape index: {}, may-alias: {0,10}]   ;;  %s1124_s1 = inlined_call_operand.vmem [shape: f32[1,256], index: 1, kind: input, shape index: {}]   ;;  %s1125_s2 = inlined_call_operand.hbm [shape: bf16[256,128], index: 2, kind: input, shape index: {}]   ;;  %s1126_s3 = inlined_call_operand.vmem [shape: f32[1,128], index: 3, kind: input, shape index: {}]   ;;  %s1127_s4 = inlined_call_operand.hbm [shape: bf16[128,128], index: 4, kind: input, shape index: {}]   ;;  %s1128_s5 = inlined_call_operand.vmem [shape: f32[1,128], index: 5, kind: input, shape index: {}]   ;;  %s1129_s6 = inlined_call_operand.hbm [shape: bf16[128,128], index: 6, kind: input, shape index: {}]   ;;  %s1130_s7 = inlined_call_operand.vmem [shape: f32[1,128], index: 7, kind: input, shape index: {}]   ;;  %s1131_s8 = inlined_call_operand.hbm [shape: bf16[128,256], index: 8, kind: input, shape index: {}]   ;;  %s1132_s9 = inlined_call_operand.vmem [shape: f32[1,256], index: 9, kind: input, shape index: {}]   ;;  %s1133_s10 = inlined_call_operand.vmem [shape: f32[16,256], index: 10, kind: output, shape index: {}, may-alias: {0,10}]  }
   0x1   :  { %16 = vsyncpa [#allocation5], 0 }
   0x2   :  { %17 = vsyncpa [#allocation8], 0  ;;  %s972_s13 = smov [#allocation4]   ;;  %s973_s15 = smov [#allocation2]  }
   0x3   :  { %s41_s14 = sshll.u32 %s972_s13, 4  ;;  %s27_s16 = sshll.u32 %s973_s15, 4  ;;  %s42_s14 = int_to_ptr.vmem [resolvable:$true] %s41_s14  ;;  %s28_s16 = int_to_ptr.vmem [resolvable:$true] %s27_s16 }
   0x4   :  { %s894_s17 = scalar_lea.vmem %s42_s14, 1024  ;;  %p899_p1 = scmp.lt.s32.totalorder %s42_s14, %s42_s14 }
   0x5   :  { %p895_p0 = scmp.ne.s32.totalorder %s42_s14, %s894_s17  ;;  %p900_p2 = scmp.lt.s32.totalorder %s894_s17, %s894_s17 }
   0x7   :  { %p901_p3 = por %p900_p2, %p899_p1 }
   0x9   :  { %p902_p4 = pnand %p901_p3, %p895_p0 }
   0xb   :  { %905 = shalt.err (!%p902_p4)
}
   0xc   :  { %s974_s18 = smov 64   ;;  %s975_s19 = smov 4  }
   0xd   :  { %47 = dma.hbm_to_vmem [thread:$0]  %s1127_s4, 1024, %s42_s14, [#allocation5], %s974_s18, %s974_s18, %s975_s19  }
   0xe   :  { %s914_s22 = scalar_lea.vmem %s28_s16, 2048  ;;  %p919_p6 = scmp.lt.s32.totalorder %s28_s16, %s28_s16 }
   0xf   :  { %p915_p5 = scmp.ne.s32.totalorder %s28_s16, %s914_s22  ;;  %p920_p7 = scmp.lt.s32.totalorder %s914_s22, %s914_s22 }
  0x11   :  { %p921_p8 = por %p920_p7, %p919_p6 }
  0x13   :  { %p922_p9 = pnand %p921_p8, %p915_p5 }
  0x15   :  { %925 = shalt.err (!%p922_p9)
}
  0x16   :  { %33 = dma.hbm_to_vmem [thread:$0]  %s1125_s2, 2048, %s28_s16, [#allocation3], %s974_s18, %s974_s18, %s975_s19  }
  0x17   :  { %s976_s25 = smov [#allocation6]   ;;  %s977_s27 = smov [#allocation7]  }
  0x18   :  { %s55_s26 = sshll.u32 %s976_s25, 4  ;;  %s69_s28 = sshll.u32 %s977_s27, 4  ;;  %s56_s26 = int_to_ptr.vmem [resolvable:$true] %s55_s26  ;;  %s70_s28 = int_to_ptr.vmem [resolvable:$true] %s69_s28 }
  0x19   :  { %s934_s29 = scalar_lea.vmem %s56_s26, 1024  ;;  %p939_p11 = scmp.lt.s32.totalorder %s56_s26, %s56_s26 }
  0x1a   :  { %p935_p10 = scmp.ne.s32.totalorder %s56_s26, %s934_s29  ;;  %p940_p12 = scmp.lt.s32.totalorder %s934_s29, %s934_s29 }
  0x1c   :  { %p941_p13 = por %p940_p12, %p939_p11 }
  0x1e   :  { %p942_p0 = pnand %p941_p13, %p935_p10 }
  0x20   :  { %945 = shalt.err (!%p942_p0)
}
  0x21   :  { %61 = dma.hbm_to_vmem [thread:$0]  %s1129_s6, 1024, %s56_s26, [#allocation5], %s974_s18, %s974_s18, %s975_s19  }
  0x22   :  { %s954_s11 = scalar_lea.vmem %s70_s28, 2048  ;;  %p959_p2 = scmp.lt.s32.totalorder %s70_s28, %s70_s28 }
  0x23   :  { %p955_p1 = scmp.ne.s32.totalorder %s70_s28, %s954_s11  ;;  %p960_p3 = scmp.lt.s32.totalorder %s954_s11, %s954_s11 }
  0x25   :  { %p961_p4 = por %p960_p3, %p959_p2 }
  0x27   :  { %p962_p5 = pnand %p961_p4, %p955_p1 }
  0x29   :  { %965 = shalt.err (!%p962_p5)
}
  0x2a   :  { %s978_s2 = smov 128   ;;  %s979_s12 = smov 8  }
  0x2b   :  { %75 = dma.hbm_to_vmem [thread:$0]  %s1131_s8, 2048, %s70_s28, [#allocation8], %s978_s2, %s978_s2, %s979_s12  }
  0x2c   :  { %966 = dma.done.wait [#allocation3], 2048  }
  0x2d   :  { %967 = vsyncadd [#allocation3], 4294965248 }
  0x2e   :  { %968 = dma.done.wait [#allocation5], 2048  }
  0x2f   :  { %969 = vsyncadd [#allocation5], 4294965248 }
  0x30   :  { %970 = dma.done.wait [#allocation8], 2048  }
  0x31   :  { %971 = vsyncadd [#allocation8], 4294965248  ;;  %v980_v0 = vmov 0.0   ;;  %v830_v1 = vld [vmem:[#allocation2 + $0x78] sm:$0xff]   ;;  %v832_v3 = vld [vmem:[#allocation2 + $0x70] sm:$0xff]   ;;  %vm981_vm0 = vmmov 0  }
  0x32   :  { %779 = vmatprep.subr.bf16.mxu1 %v980_v0  ;;  %v831_v2 = vld [vmem:[#allocation2 + $0x38] sm:$0xff]   ;;  %739 = vmatprep.subr.bf16.mxu0 %v830_v1  ;;  %v833_v4 = vld [vmem:[#allocation2 + $0x30] sm:$0xff]   ;;  %v834_v5 = vld [vmem:[#allocation2 + $0x68] sm:$0xff]  }
  0x33   :  { %740 = vmatpush3.bf16.msra.mxu0 %v831_v2  ;;  %v835_v6 = vld [vmem:[#allocation2 + $0x28] sm:$0xff]   ;;  %v836_v7 = vld [vmem:[#allocation2 + $0x60] sm:$0xff]   ;;  %v838_v9 = vld [vmem:[#allocation2 + $0x58] sm:$0xff]   ;;  %795 = vmatprep.mubr.msk.bf16.mxu1 %vm981_vm0, %v980_v0 }
  0x34   :  { %741 = vmatprep.subr.bf16.mxu0 %v832_v3  ;;  %v837_v8 = vld [vmem:[#allocation2 + $0x20] sm:$0xff]   ;;  %v839_v10 = vld [vmem:[#allocation2 + $0x18] sm:$0xff]   ;;  %v840_v11 = vld [vmem:[#allocation2 + $0x50] sm:$0xff]  }
  0x35   :  { %v1054_v12 = vld [vmem:[%s1123_s0 + $0x8] sm:$0xff]  ;;  %v1059_v13 = vld [vmem:[%s1123_s0 + $0x18] sm:$0xff]  ;;  %v841_v14 = vld [vmem:[#allocation2 + $0x10] sm:$0xff]  }
  0x36   :  { %v97_v15 = vpack.c.bf16 %v1059_v13, %v1054_v12  ;;  %v846_v16 = vld [vmem:[#allocation4 + $0x38] sm:$0xff]   ;;  %v842_v17 = vld [vmem:[#allocation2 + $0x48] sm:$0xff]   ;;  %v847_v18 = vld [vmem:[#allocation4 + $0x30] sm:$0xff]  }
  0x37   :  { %742 = vmatpush3.bf16.msra.mxu0 %v833_v4  ;;  %780 = vmatpush3.bf16.msra.mxu1 %v846_v16  ;;  %v843_v19 = vld [vmem:[#allocation2 + $0x8] sm:$0xff]   ;;  %v844_v20 = vld [vmem:[#allocation2 + $0x40] sm:$0xff]   ;;  %v1072_v24 = vld [vmem:[%s1123_s0 + $0x10] sm:$0xff] }
  0x38   :  { %743 = vmatprep.subr.bf16.mxu0 %v834_v5  ;;  %265 = vmatprep.mubr.bf16.mxu0 %v97_v15  ;;  %v848_v21 = vld [vmem:[#allocation4 + $0x28] sm:$0xff]   ;;  %v845_v22 = vld [vmem:[#allocation2] sm:$0xff]   ;;  %v850_v27 = vld [vmem:[#allocation4 + $0x18] sm:$0xff]   ;;  %v982_v15 = vmov 0  }
  0x39   :  { %781 = vmatprep.subr.bf16.mxu1 %v980_v0  ;;  %v1067_v23 = vld [vmem:[%s1123_s0] sm:$0xff]  ;;  %v851_v28 = vld [vmem:[#allocation4 + $0x10] sm:$0xff]   ;;  %v852_v29 = vld [vmem:[#allocation4 + $0x8] sm:$0xff]  }
  0x3a   :  { %v849_v25 = vld [vmem:[#allocation4 + $0x20] sm:$0xff]   ;;  %v96_v26 = vpack.c.bf16 %v1072_v24, %v1067_v23  ;;  %v854_v31 = vld [vmem:[#allocation6 + $0x38] sm:$0xff]   ;;  %v855_v32 = vld [vmem:[#allocation6 + $0x30] sm:$0xff]  }
  0x3b   :  { %744 = vmatpush3.bf16.msra.mxu0 %v835_v6  ;;  %782 = vmatpush3.bf16.msra.mxu1 %v847_v18  ;;  %v853_v30 = vld [vmem:[#allocation4] sm:$0xff]   ;;  %v856_v33 = vld [vmem:[#allocation6 + $0x28] sm:$0xff]   ;;  %v858_v35 = vld [vmem:[#allocation6 + $0x18] sm:$0xff]  }
  0x3c   :  { %745 = vmatprep.subr.bf16.mxu0 %v836_v7  ;;  %783 = vmatprep.subr.bf16.mxu1 %v980_v0  ;;  %v857_v34 = vld [vmem:[#allocation6 + $0x20] sm:$0xff]   ;;  %v859_v48 = vld [vmem:[#allocation6 + $0x10] sm:$0xff]   ;;  %v860_v49 = vld [vmem:[#allocation6 + $0x8] sm:$0xff]  }
  0x3d   :  { %v688_v39 = vld [vmem:[%s1126_s3] ss:$0 sm:$0xff]  ;;  %v862_v51 = vld [vmem:[#allocation7 + $0x70] ss:$8 sps:$4 sm:$0xff]   ;;  %v864_v52 = vld [vmem:[#allocation7 + $0x74] ss:$8 sps:$4 sm:$0xff]  }
  0x3e   :  { %v861_v50 = vld [vmem:[#allocation6] sm:$0xff]   ;;  %v870_v55 = vld [vmem:[#allocation7 + $0x54] ss:$8 sps:$4 sm:$0xff]   ;;  %v868_v56 = vld [vmem:[#allocation7 + $0x50] ss:$8 sps:$4 sm:$0xff]  }
  0x3f   :  { %746 = vmatpush3.bf16.msra.mxu0 %v837_v8  ;;  %784 = vmatpush3.bf16.msra.mxu1 %v848_v21  ;;  %v867_v53 = vld [vmem:[#allocation7 + $0x64] ss:$8 sps:$4 sm:$0xff]   ;;  %v865_v54 = vld [vmem:[#allocation7 + $0x60] ss:$8 sps:$4 sm:$0xff]   ;;  %v876_v59 = vld [vmem:[#allocation7 + $0x34] ss:$8 sps:$4 sm:$0xff]  }
  0x40   :  { %747 = vmatprep.subr.bf16.mxu0 %v838_v9  ;;  %785 = vmatprep.subr.bf16.mxu1 %v980_v0  ;;  %v873_v57 = vld [vmem:[#allocation7 + $0x44] ss:$8 sps:$4 sm:$0xff]   ;;  %v871_v58 = vld [vmem:[#allocation7 + $0x40] ss:$8 sps:$4 sm:$0xff]   ;;  %v874_v60 = vld [vmem:[#allocation7 + $0x30] ss:$8 sps:$4 sm:$0xff]  }
  0x41   :  { %v879_v61 = vld [vmem:[#allocation7 + $0x24] ss:$8 sps:$4 sm:$0xff]   ;;  %v877_v62 = vld [vmem:[#allocation7 + $0x20] ss:$8 sps:$4 sm:$0xff]   ;;  %v882_v9 = vld [vmem:[#allocation7 + $0x14] ss:$8 sps:$4 sm:$0xff]  }
  0x42   :  { %v705_v63 = vld [vmem:[%s1128_s5] ss:$0 sm:$0xff] }
  0x43   :  { %748 = vmatpush3.bf16.msra.mxu0 %v839_v10  ;;  %786 = vmatpush3.bf16.msra.mxu1 %v849_v25  ;;  %v880_v10 = vld [vmem:[#allocation7 + $0x10] ss:$8 sps:$4 sm:$0xff]   ;;  %v714_v16 = vld [vmem:[%s1130_s7] ss:$0 sm:$0xff] }
  0x44   :  { %749 = vmatprep.subr.bf16.mxu0 %v840_v11  ;;  %787 = vmatprep.subr.bf16.mxu1 %v980_v0  ;;  %v885_v11 = vld [vmem:[#allocation7 + $0x4] ss:$8 sps:$4 sm:$0xff]  }
  0x47   :  { %750 = vmatpush3.bf16.msra.mxu0 %v841_v14  ;;  %788 = vmatpush3.bf16.msra.mxu1 %v850_v27  ;;  %v883_v14 = vld [vmem:[#allocation7] ss:$8 sps:$4 sm:$0xff]  }
  0x48   :  { %751 = vmatprep.subr.bf16.mxu0 %v842_v17  ;;  %789 = vmatprep.subr.bf16.mxu1 %v980_v0 }
  0x4b   :  { %752 = vmatpush3.bf16.msra.mxu0 %v843_v19  ;;  %790 = vmatpush3.bf16.msra.mxu1 %v851_v28  ;;  %v525_v28 = vlaneseq }
  0x4c   :  { %753 = vmatprep.subr.bf16.mxu0 %v844_v20  ;;  %791 = vmatprep.subr.bf16.mxu1 %v980_v0 }
  0x4f   :  { %754 = vmatpush3.bf16.msra.mxu0 %v845_v22  ;;  %792 = vmatpush3.bf16.msra.mxu1 %v852_v29  ;;  %v526_v29 = vshrl.u32 %v525_v28, 7 }
  0x50   :  { %799 = vmatprep.subr.bf16.mxu0 %v980_v0  ;;  %793 = vmatprep.subr.bf16.mxu1 %v980_v0 }
  0x52   :  { %266 = vmatmul.mubr.bf16.vlgmr.msra.gmra.mxu0 %v96_v26 }
  0x53   :  { %794 = vmatpush3.bf16.msra.mxu1 %v853_v30  ;;  %815 = vmatprep.mubr.msk.bf16.mxu0 %vm981_vm0, %v980_v0  ;;  %v527_v30 = vsub.s32 0, %v526_v29 }
  0x54   :  { %800 = vmatpush3.bf16.msra.mxu0 %v854_v31  ;;  %615 = vmatprep.subr.bf16.mxu1 %v864_v52  ;;  %v95_v31 = vld [vmem:[%s1124_s1] sm:$0x3] }
  0x55   :  { %801 = vmatprep.subr.bf16.mxu0 %v980_v0 }
  0x58   :  { %802 = vmatpush3.bf16.msra.mxu0 %v855_v32  ;;  %v531_v32 = vsub.s32 1, %v526_v29 }
  0x59   :  { %803 = vmatprep.subr.bf16.mxu0 %v980_v0 }
  0x5c   :  { %804 = vmatpush3.bf16.msra.mxu0 %v856_v33  ;;  %v523_v33 = vld [vmem:[%s1132_s9] sm:$0x3] }
  0x5d   :  { %805 = vmatprep.subr.bf16.mxu0 %v980_v0 }
  0x60   :  { %806 = vmatpush3.bf16.msra.mxu0 %v857_v34  ;;  %v662_v34 = vrot.slane %v95_v31, %v527_v30 }
  0x61   :  { %807 = vmatprep.subr.bf16.mxu0 %v980_v0 }
  0x64   :  { %808 = vmatpush3.bf16.msra.mxu0 %v858_v35  ;;  %v528_v35 = vrot.slane %v523_v33, %v527_v30 }
  0x65   :  { %809 = vmatprep.subr.bf16.mxu0 %v980_v0 }
  0x68   :  { %810 = vmatpush3.bf16.msra.mxu0 %v859_v48 }
  0x69   :  { %811 = vmatprep.subr.bf16.mxu0 %v980_v0 }
  0x6c   :  { %812 = vmatpush3.bf16.msra.mxu0 %v860_v49 }
  0x6d   :  { %813 = vmatprep.subr.bf16.mxu0 %v980_v0 }
  0x70   :  { %814 = vmatpush3.bf16.msra.mxu0 %v861_v50 }
 0x112   :  { %v755_v36 = vpop.f32.mrf.mxu0 }
 0x114   :  { %v756_v37 = vpop.f32.mrf.mxu0 }
 0x115   :  { %v757_v38 = vadd.f32 %v756_v37, %v755_v36  ;;  %v666_v36 = vrot.slane %v95_v31, %v531_v32  ;;  %v669_v37 = vmul.f32 %v662_v34, %v1067_v23 }
 0x116   :  { %v758_v40 = vpop.f32.mrf.mxu0 }
 0x117   :  { %v268_v42 = vadd.f32 %v757_v38, %v688_v39  ;;  %v532_v38 = vrot.slane %v523_v33, %v531_v32  ;;  %v672_v49 = vmul.f32 %v666_v36, %v1059_v13 }
 0x118   :  { %v759_v41 = vpop.f32.mrf.mxu0 }
 0x119   :  { %v760_v43 = vadd.f32 %v759_v41, %v758_v40  ;;  %v274_v45 = vmax.f32 %v268_v42, 0.0  ;;  %v670_v41 = vmul.f32 %v666_v36, %v1054_v12 }
 0x11b   :  { %v271_v44 = vadd.f32 %v760_v43, %v688_v39 }
 0x11d   :  { %v275_v46 = vmax.f32 %v271_v44, 0.0 }
 0x11f   :  { %v276_v47 = vpack.c.bf16 %v275_v46, %v274_v45  ;;  %v671_v45 = vmul.f32 %v662_v34, %v1072_v24 }
 0x121   :  { %796 = vmatmul.mubr.bf16.vlgmr.msra.gmra.mxu1 %v276_v47 }
 0x122   :  { %616 = vmatpush1.bf16.msra.mxu1 %v862_v51  ;;  %647 = vmatprep.mubr.bf16.mxu1 %v982_v15 }
 0x123   :  { %617 = vmatprep.subr.bf16.mxu1 %v867_v53 }
 0x126   :  { %618 = vmatpush1.bf16.msra.mxu1 %v865_v54 }
 0x127   :  { %619 = vmatprep.subr.bf16.mxu1 %v870_v55 }
 0x12a   :  { %620 = vmatpush1.bf16.msra.mxu1 %v868_v56 }
 0x12b   :  { %621 = vmatprep.subr.bf16.mxu1 %v873_v57 }
 0x12e   :  { %622 = vmatpush1.bf16.msra.mxu1 %v871_v58 }
 0x12f   :  { %623 = vmatprep.subr.bf16.mxu1 %v876_v59 }
 0x132   :  { %624 = vmatpush1.bf16.msra.mxu1 %v874_v60 }
 0x133   :  { %625 = vmatprep.subr.bf16.mxu1 %v879_v61 }
 0x136   :  { %626 = vmatpush1.bf16.msra.mxu1 %v877_v62 }
 0x137   :  { %627 = vmatprep.subr.bf16.mxu1 %v882_v9 }
 0x13a   :  { %628 = vmatpush1.bf16.msra.mxu1 %v880_v10 }
 0x13b   :  { %629 = vmatprep.subr.bf16.mxu1 %v885_v11 }
 0x13e   :  { %630 = vmatpush1.bf16.msra.mxu1 %v883_v14 }
 0x1e1   :  { %v382_v0 = vpop.f32.mrf.mxu1 }
 0x1e2   :  { %v383_v2 = vadd.f32 %v705_v63, %v382_v0 }
 0x1e3   :  { %v797_v1 = vpop.f32.mrf.mxu1 }
 0x1e4   :  { %v389_v6 = vmax.f32 %v383_v2, 0.0 }
 0x1e5   :  { %v385_v3 = vpop.f32.mrf.mxu1 }
 0x1e6   :  { %v386_v4 = vadd.f32 %v705_v63, %v385_v3 }
 0x1e7   :  { %v798_v5 = vpop.f32.mrf.mxu1 }
 0x1e8   :  { %v390_v7 = vmax.f32 %v386_v4, 0.0 }
 0x1ea   :  { %v391_v8 = vpack.c.bf16 %v390_v7, %v389_v6 }
 0x1ec   :  { %816 = vmatmul.mubr.bf16.vlgmr.msra.gmra.mxu0 %v391_v8 }
 0x2ac   :  { %v497_v17 = vpop.f32.mrf.mxu0 }
 0x2ad   :  { %v498_v19 = vadd.f32 %v714_v16, %v497_v17 }
 0x2ae   :  { %v817_v18 = vpop.f32.mrf.mxu0 }
 0x2af   :  { %v504_v25 = vmax.f32 %v498_v19, 0.0 }
 0x2b0   :  { %v500_v20 = vpop.f32.mrf.mxu0 }
 0x2b1   :  { %v501_v21 = vadd.f32 %v714_v16, %v500_v20 }
 0x2b2   :  { %v818_v22 = vpop.f32.mrf.mxu0 }
 0x2b3   :  { %v505_v26 = vmax.f32 %v501_v21, 0.0 }
 0x2b5   :  { %v506_v27 = vpack.c.bf16 %v505_v26, %v504_v25 }
 0x2b7   :  { %648 = vmatmul.mubr.bf16.vlgmr.msra.gmra.mxu1 %v506_v27 }
 0x377   :  { %v649_v39 = vpop.f32.mrf.mxu1 }
 0x378   :  { %v650_v40 = vadd.f32 %v649_v39, %v528_v35 }
 0x379   :  { %v651_v42 = vpop.f32.mrf.mxu1 }
 0x37a   :  { %v673_v43 = vadd.f32 %v669_v37, %v650_v40  ;;  %v652_v44 = vadd.f32 %v651_v42, %v532_v38 }
 0x37b   :  { %v653_v46 = vpop.f32.mrf.mxu1 }
 0x37c   :  { %677 = vst [vmem:[%s1133_s10] sm:$0xff] %v673_v43  ;;  %v674_v47 = vadd.f32 %v670_v41, %v652_v44  ;;  %v654_v48 = vadd.f32 %v653_v46, %v528_v35 }
 0x37d   :  { %v655_v23 = vpop.f32.mrf.mxu1 }
 0x37e   :  { %678 = vst [vmem:[%s1133_s10 + $0x8] sm:$0xff] %v674_v47  ;;  %v675_v12 = vadd.f32 %v671_v45, %v654_v48  ;;  %v656_v50 = vadd.f32 %v655_v23, %v532_v38 }
 0x380   :  { %679 = vst [vmem:[%s1133_s10 + $0x10] sm:$0xff] %v675_v12  ;;  %v676_v24 = vadd.f32 %v672_v49, %v656_v50 }
 0x382   :  { %680 = vst [vmem:[%s1133_s10 + $0x18] sm:$0xff] %v676_v24 }
 0x383   :  { %685 = vsyncpa [#allocation3], 1 }
 0x384   :  { %686 = vsyncpa [#allocation5], 1 }
 0x385   :  { %687 = vsyncpa [#allocation8], 1 }

</bundles_post_ra>
